<compile_context>
chip_gen: v7x
topology: tpu7x:2x2x1
jax: 0.10.0
libtpu: 0.0.40
codegen_flags: <defaults>
</compile_context>

<pallas_src>
import functools

import jax
import jax.numpy as jnp
from jax import lax
from jax.experimental import pallas as pl
from jax.experimental.pallas import tpu as pltpu


# ----------------------------- fused Pallas kernel ----------------------------- #

def _fused_policy_kernel(obs_ref, hx_ref, cx_ref,
                         wconv_ref, bconv_ref,
                         wih_ref, whh_ref, blstm_ref,
                         wfc_ref, bfc_ref,
                         probs_ref, h_out_ref, c_out_ref, *, act):
    # conv as one dense matmul against the precomputed unrolled conv weight:
    # (B, Cin*H*W) @ (Cin*H*W, Cout*P) -> (B, Cout*P), already in PyTorch .view order.
    z = jnp.dot(obs_ref[...], wconv_ref[...], preferred_element_type=jnp.float32)
    z = z + bconv_ref[...]
    x = jnp.tanh(z) if act == "tanh" else jnp.maximum(z, 0.0)

    # LSTMCell: gates = x @ W_ih^T + h @ W_hh^T + (b_ih + b_hh)
    gates = (jnp.dot(x, wih_ref[...], preferred_element_type=jnp.float32)
             + jnp.dot(hx_ref[...], whh_ref[...], preferred_element_type=jnp.float32)
             + blstm_ref[...])
    H = hx_ref.shape[-1]
    i_g = jax.nn.sigmoid(gates[:, 0 * H:1 * H])
    f_g = jax.nn.sigmoid(gates[:, 1 * H:2 * H])
    g_g = jnp.tanh(gates[:, 2 * H:3 * H])
    o_g = jax.nn.sigmoid(gates[:, 3 * H:4 * H])

    c_new = f_g * cx_ref[...] + i_g * g_g
    h_new = o_g * jnp.tanh(c_new)
    c_out_ref[...] = c_new
    h_out_ref[...] = h_new

    # fc + numerically stable softmax(dim=-1)
    logits = jnp.dot(h_new, wfc_ref[...], preferred_element_type=jnp.float32) + bfc_ref[...]
    m = jnp.max(logits, axis=-1, keepdims=True)
    e = jnp.exp(logits - m)
    denom = jnp.sum(e, axis=-1, keepdims=True)
    # pl.reciprocal(approx=True) would move the divide onto the EUP slot, but we keep
    # the exact form so the 1e-5 correctness check against the reference stays tight.
    probs_ref[...] = e * pl.reciprocal(denom, approx=False)


def fused_policy_pallas(obs_flat, hx, cx, prep, act):
    B = obs_flat.shape[0]
    H = hx.shape[-1]
    A = prep["w_fc_t"].shape[-1]
    vmem = pl.BlockSpec(memory_space=pltpu.MemorySpace.VMEM)   # whole array resident in VMEM
    out_shapes = (jax.ShapeDtypeStruct((B, A), jnp.float32),   # probs
                  jax.ShapeDtypeStruct((B, H), jnp.float32),   # h_new
                  jax.ShapeDtypeStruct((B, H), jnp.float32))   # c_new
    # TODO(synk): when batch is scaled up, add a leading batch grid axis with
    # dimension_semantics=("parallel",) so both v7x TensorCores get work.
    return pl.pallas_call(
        functools.partial(_fused_policy_kernel, act=act),
        in_specs=[vmem] * 10,
        out_specs=(vmem, vmem, vmem),
        out_shape=out_shapes,
    )(obs_flat, hx, cx,
      prep["w_conv"], prep["b_conv"],
      prep["w_ih_t"], prep["w_hh_t"], prep["b_lstm"],
      prep["w_fc_t"], prep["b_fc"])


# --------------------------- one-time parameter prep ------------------------ #

def prepare_params(params, matrix_size):
    """Hoist ALL per-step weight re-layouts to parameter-load time."""
    Wc = jnp.asarray(params["conv_w"])          # (Cout, Cin, ks, ks)
    bc = jnp.asarray(params["conv_b"])
    Cout, Cin, ks, _ = Wc.shape
    Hh = Ww = matrix_size
    n = Hh - ks + 1
    P = n * n
    K = Cin * Hh * Ww
    N = Cout * P

    # Unrolled (Toeplitz-style) conv weight: one dense matmul reproduces
    # NCHW valid conv + .view(B, -1) exactly (column order co*P + ph*n + pw).
    co, ph, pw, ci, kh, kw = jnp.meshgrid(
        jnp.arange(Cout), jnp.arange(n), jnp.arange(n),
        jnp.arange(Cin), jnp.arange(ks), jnp.arange(ks), indexing="ij")
    rows = (ci * (Hh * Ww) + (ph + kh) * Ww + (pw + kw)).ravel()
    cols = (co * P + ph * n + pw).ravel()
    vals = Wc[co, ci, kh, kw].ravel()
    w_conv = jnp.zeros((K, N), jnp.float32).at[rows, cols].set(vals)
    b_conv = jnp.repeat(bc, P).reshape(1, N)

    return dict(
        w_conv=w_conv,                                          # (Cin*H*W, Cout*P)
        b_conv=b_conv,                                          # (1, Cout*P)
        w_ih_t=jnp.asarray(params["w_ih"]).T,                   # (Cout*P, 4H)
        w_hh_t=jnp.asarray(params["w_hh"]).T,                   # (H, 4H)
        b_lstm=(jnp.asarray(params["b_ih"])
                + jnp.asarray(params["b_hh"])).reshape(1, -1),  # (1, 4H)
        w_fc_t=jnp.asarray(params["fc_w"]).T,                   # (H, A)
        b_fc=jnp.asarray(params["fc_b"]).reshape(1, -1),        # (1, A)
    )


def init_params(key, matrix_size, num_channels, action_dim, hidden_dim):
    ks, cout = 3, 8
    n = (matrix_size - ks) // 1 + 1
    lstm_input = cout * n * n
    keys = jax.random.split(key, 8)

    def u(k, shape, fan_in):
        s = 1.0 / jnp.sqrt(jnp.float32(fan_in))
        return jax.random.uniform(k, shape, jnp.float32, -s, s)

    return dict(
        conv_w=u(keys[0], (cout, num_channels, ks, ks), num_channels * ks * ks),
        conv_b=u(keys[1], (cout,), num_channels * ks * ks),
        w_ih=u(keys[2], (4 * hidden_dim, lstm_input), hidden_dim),
        w_hh=u(keys[3], (4 * hidden_dim, hidden_dim), hidden_dim),
        b_ih=u(keys[4], (4 * hidden_dim,), hidden_dim),
        b_hh=u(keys[5], (4 * hidden_dim,), hidden_dim),
        fc_w=u(keys[6], (action_dim, hidden_dim), hidden_dim),
        fc_b=u(keys[7], (action_dim,), hidden_dim),
    )


# ---------------------------------- forward --------------------------------- #

@functools.partial(jax.jit, static_argnames=("act",))
def lstm_policy_forward(prep, obs, hx, cx, act="tanh"):
    if obs.ndim != 4:
        raise Exception("Input tensor should have dim = 4")
    obs_flat = obs.reshape(obs.shape[0], -1)   # NCHW flatten; the only per-step glue op
    return fused_policy_pallas(obs_flat, hx, cx, prep, act)


# --------------------------- pure-JAX reference ---------------------------- #

def torch_style_reference(params, obs, hx, cx, act="tanh"):
    Wc, bc = params["conv_w"], params["conv_b"]
    Wih, Whh = params["w_ih"], params["w_hh"]
    bih, bhh = params["b_ih"], params["b_hh"]
    Wfc, bfc = params["fc_w"], params["fc_b"]

    y = lax.conv_general_dilated(obs, Wc, (1, 1), "VALID",
                                 dimension_numbers=("NCHW", "OIHW", "NCHW"))
    y = y + bc[None, :, None, None]
    y = jnp.tanh(y) if act == "tanh" else jnp.maximum(y, 0.0)
    x = y.reshape(obs.shape[0], -1)                    # PyTorch NCHW .view(B, -1)

    gates = x @ Wih.T + bih + hx @ Whh.T + bhh
    H = hx.shape[1]
    i = jax.nn.sigmoid(gates[:, :H])
    f = jax.nn.sigmoid(gates[:, H:2 * H])
    g = jnp.tanh(gates[:, 2 * H:3 * H])
    o = jax.nn.sigmoid(gates[:, 3 * H:])
    c = f * cx + i * g
    h = o * jnp.tanh(c)
    logits = h @ Wfc.T + bfc
    return jax.nn.softmax(logits, axis=-1), h, c


# ---------------------------------- main ----------------------------------- #

if __name__ == "__main__":
    matrix_size = 8
    num_channels = 4
    action_dim = 4
    hidden_dim = 32
    batch = 2
    activation_function = "tanh"

    key = jax.random.PRNGKey(0)
    kp, ko, kh, kc = jax.random.split(key, 4)
    params = init_params(kp, matrix_size, num_channels, action_dim, hidden_dim)
    prep = prepare_params(params, matrix_size)          # one-time weight re-layout

    obs = jax.random.normal(ko, (batch, num_channels, matrix_size, matrix_size), jnp.float32)
    hx = jax.random.normal(kh, (batch, hidden_dim), jnp.float32) * 0.1
    cx = jax.random.normal(kc, (batch, hidden_dim), jnp.float32) * 0.1

    probs, h_new, c_new = lstm_policy_forward(prep, obs, hx, cx, act=activation_function)
    jax.block_until_ready((probs, h_new, c_new))

    probs_r, h_r, c_r = torch_style_reference(params, obs, hx, cx, act=activation_function)
    assert jnp.allclose(probs, probs_r, atol=1e-5, rtol=1e-5)
    assert jnp.allclose(h_new, h_r, atol=1e-5, rtol=1e-5)
    assert jnp.allclose(c_new, c_r, atol=1e-5, rtol=1e-5)

    print("KERNEL_OK")
</pallas_src>

<mosaic_0001>
module attributes {stable_mosaic.version = 11 : i64} {
  func.func @_fused_policy_kernel(%arg0: memref<2x256xf32, #tpu.memory_space<vmem>>, %arg1: memref<2x32xf32, #tpu.memory_space<vmem>>, %arg2: memref<2x32xf32, #tpu.memory_space<vmem>>, %arg3: memref<256x288xf32, #tpu.memory_space<vmem>>, %arg4: memref<1x288xf32, #tpu.memory_space<vmem>>, %arg5: memref<288x128xf32, #tpu.memory_space<vmem>>, %arg6: memref<32x128xf32, #tpu.memory_space<vmem>>, %arg7: memref<1x128xf32, #tpu.memory_space<vmem>>, %arg8: memref<32x4xf32, #tpu.memory_space<vmem>>, %arg9: memref<1x4xf32, #tpu.memory_space<vmem>>, %arg10: memref<2x4xf32, #tpu.memory_space<vmem>>, %arg11: memref<2x32xf32, #tpu.memory_space<vmem>>, %arg12: memref<2x32xf32, #tpu.memory_space<vmem>>) attributes {dimension_semantics = [], scalar_prefetch = 0 : i64, scratch_operands = 0 : i64, tpu.core_type = #tpu.core_type<tc>} {
    %c0 = arith.constant 0 : index
    %c0_0 = arith.constant 0 : index
    %0 = vector.load %arg0[%c0, %c0_0] : memref<2x256xf32, #tpu.memory_space<vmem>>, vector<2x256xf32>
    %c0_1 = arith.constant 0 : index
    %c0_2 = arith.constant 0 : index
    %1 = vector.load %arg3[%c0_1, %c0_2] : memref<256x288xf32, #tpu.memory_space<vmem>>, vector<256x288xf32>
    %cst = arith.constant dense<0.000000e+00> : vector<2x288xf32>
    %2 = tpu.matmul %0, %1, %cst {dimension_numbers = #tpu.dot_dimension_numbers<[1], [0], [0], [1], [0, 0, 1, 1], [], []>} : vector<2x256xf32>, vector<256x288xf32>, vector<2x288xf32> -> vector<2x288xf32>
    %c0_3 = arith.constant 0 : index
    %c0_4 = arith.constant 0 : index
    %3 = vector.load %arg4[%c0_3, %c0_4] : memref<1x288xf32, #tpu.memory_space<vmem>>, vector<1x288xf32>
    %4 = vector.broadcast %3 : vector<1x288xf32> to vector<2x288xf32>
    %5 = arith.addf %2, %4 : vector<2x288xf32>
    %6 = math.tanh %5 : vector<2x288xf32>
    %c0_5 = arith.constant 0 : index
    %c0_6 = arith.constant 0 : index
    %7 = vector.load %arg5[%c0_5, %c0_6] : memref<288x128xf32, #tpu.memory_space<vmem>>, vector<288x128xf32>
    %cst_7 = arith.constant dense<0.000000e+00> : vector<2x128xf32>
    %8 = tpu.matmul %6, %7, %cst_7 {dimension_numbers = #tpu.dot_dimension_numbers<[1], [0], [0], [1], [0, 0, 1, 1], [], []>} : vector<2x288xf32>, vector<288x128xf32>, vector<2x128xf32> -> vector<2x128xf32>
    %c0_8 = arith.constant 0 : index
    %c0_9 = arith.constant 0 : index
    %9 = vector.load %arg1[%c0_8, %c0_9] : memref<2x32xf32, #tpu.memory_space<vmem>>, vector<2x32xf32>
    %c0_10 = arith.constant 0 : index
    %c0_11 = arith.constant 0 : index
    %10 = vector.load %arg6[%c0_10, %c0_11] : memref<32x128xf32, #tpu.memory_space<vmem>>, vector<32x128xf32>
    %cst_12 = arith.constant dense<0.000000e+00> : vector<2x128xf32>
    %11 = tpu.matmul %9, %10, %cst_12 {dimension_numbers = #tpu.dot_dimension_numbers<[1], [0], [0], [1], [0, 0, 1, 1], [], []>} : vector<2x32xf32>, vector<32x128xf32>, vector<2x128xf32> -> vector<2x128xf32>
    %12 = arith.addf %8, %11 : vector<2x128xf32>
    %c0_13 = arith.constant 0 : index
    %c0_14 = arith.constant 0 : index
    %13 = vector.load %arg7[%c0_13, %c0_14] : memref<1x128xf32, #tpu.memory_space<vmem>>, vector<1x128xf32>
    %14 = vector.broadcast %13 : vector<1x128xf32> to vector<2x128xf32>
    %15 = arith.addf %12, %14 : vector<2x128xf32>
    %16 = vector.extract_strided_slice %15 {offsets = [0, 0], sizes = [2, 32], strides = [1, 1]} : vector<2x128xf32> to vector<2x32xf32>
    %17 = arith.negf %16 : vector<2x32xf32>
    %18 = math.exp %17 : vector<2x32xf32>
    %cst_15 = arith.constant 1.000000e+00 : f32
    %19 = vector.broadcast %cst_15 : f32 to vector<2x32xf32>
    %20 = arith.addf %19, %18 : vector<2x32xf32>
    %21 = arith.divf %19, %20 : vector<2x32xf32>
    %22 = vector.extract_strided_slice %15 {offsets = [0, 32], sizes = [2, 32], strides = [1, 1]} : vector<2x128xf32> to vector<2x32xf32>
    %23 = arith.negf %22 : vector<2x32xf32>
    %24 = math.exp %23 : vector<2x32xf32>
    %cst_16 = arith.constant 1.000000e+00 : f32
    %25 = vector.broadcast %cst_16 : f32 to vector<2x32xf32>
    %26 = arith.addf %25, %24 : vector<2x32xf32>
    %27 = arith.divf %25, %26 : vector<2x32xf32>
    %28 = vector.extract_strided_slice %15 {offsets = [0, 64], sizes = [2, 32], strides = [1, 1]} : vector<2x128xf32> to vector<2x32xf32>
    %29 = math.tanh %28 : vector<2x32xf32>
    %30 = vector.extract_strided_slice %15 {offsets = [0, 96], sizes = [2, 32], strides = [1, 1]} : vector<2x128xf32> to vector<2x32xf32>
    %31 = arith.negf %30 : vector<2x32xf32>
    %32 = math.exp %31 : vector<2x32xf32>
    %cst_17 = arith.constant 1.000000e+00 : f32
    %33 = vector.broadcast %cst_17 : f32 to vector<2x32xf32>
    %34 = arith.addf %33, %32 : vector<2x32xf32>
    %35 = arith.divf %33, %34 : vector<2x32xf32>
    %c0_18 = arith.constant 0 : index
    %c0_19 = arith.constant 0 : index
    %36 = vector.load %arg2[%c0_18, %c0_19] : memref<2x32xf32, #tpu.memory_space<vmem>>, vector<2x32xf32>
    %37 = arith.mulf %27, %36 : vector<2x32xf32>
    %38 = arith.mulf %21, %29 : vector<2x32xf32>
    %39 = arith.addf %37, %38 : vector<2x32xf32>
    %40 = math.tanh %39 : vector<2x32xf32>
    %41 = arith.mulf %35, %40 : vector<2x32xf32>
    %c0_20 = arith.constant 0 : index
    %c0_21 = arith.constant 0 : index
    %42 = vector.load %arg12[%c0_20, %c0_21] : memref<2x32xf32, #tpu.memory_space<vmem>>, vector<2x32xf32>
    tpu.vector_store %arg12[%c0_20, %c0_21], %39 {strides = array<i32>} : memref<2x32xf32, #tpu.memory_space<vmem>>, vector<2x32xf32>,
    %c0_22 = arith.constant 0 : index
    %c0_23 = arith.constant 0 : index
    %43 = vector.load %arg11[%c0_22, %c0_23] : memref<2x32xf32, #tpu.memory_space<vmem>>, vector<2x32xf32>
    tpu.vector_store %arg11[%c0_22, %c0_23], %41 {strides = array<i32>} : memref<2x32xf32, #tpu.memory_space<vmem>>, vector<2x32xf32>,
    %c0_24 = arith.constant 0 : index
    %c0_25 = arith.constant 0 : index
    %44 = vector.load %arg8[%c0_24, %c0_25] : memref<32x4xf32, #tpu.memory_space<vmem>>, vector<32x4xf32>
    %cst_26 = arith.constant dense<0.000000e+00> : vector<2x4xf32>
    %45 = tpu.matmul %41, %44, %cst_26 {dimension_numbers = #tpu.dot_dimension_numbers<[1], [0], [0], [1], [0, 0, 1, 1], [], []>} : vector<2x32xf32>, vector<32x4xf32>, vector<2x4xf32> -> vector<2x4xf32>
    %c0_27 = arith.constant 0 : index
    %c0_28 = arith.constant 0 : index
    %46 = vector.load %arg9[%c0_27, %c0_28] : memref<1x4xf32, #tpu.memory_space<vmem>>, vector<1x4xf32>
    %47 = vector.broadcast %46 : vector<1x4xf32> to vector<2x4xf32>
    %48 = arith.addf %45, %47 : vector<2x4xf32>
    %cst_29 = arith.constant dense<0xFF800000> : vector<2xf32>
    %49 = vector.multi_reduction <maximumf>, %48, %cst_29 [1] : vector<2x4xf32> to vector<2xf32>
    %50 = vector.shape_cast %49 : vector<2xf32> to vector<2x1xf32>
    %51 = vector.broadcast %50 : vector<2x1xf32> to vector<2x4xf32>
    %52 = arith.subf %48, %51 : vector<2x4xf32>
    %53 = math.exp %52 : vector<2x4xf32>
    %cst_30 = arith.constant dense<0.000000e+00> : vector<2xf32>
    %54 = vector.multi_reduction <add>, %53, %cst_30 [1] : vector<2x4xf32> to vector<2xf32>
    %55 = vector.shape_cast %54 : vector<2xf32> to vector<2x1xf32>
    %56 = tpu.reciprocal %55 : vector<2x1xf32> -> vector<2x1xf32>
    %57 = vector.broadcast %56 : vector<2x1xf32> to vector<2x4xf32>
    %58 = arith.mulf %53, %57 : vector<2x4xf32>
    %c0_31 = arith.constant 0 : index
    %c0_32 = arith.constant 0 : index
    %59 = vector.load %arg10[%c0_31, %c0_32] : memref<2x4xf32, #tpu.memory_space<vmem>>, vector<2x4xf32>
    tpu.vector_store %arg10[%c0_31, %c0_32], %58 {strides = array<i32>} : memref<2x4xf32, #tpu.memory_space<vmem>>, vector<2x4xf32>,
    return
  }
}

</mosaic_0001>

<bundles_post_ra>
// kernel: lstm_policy_forward.1
= control target key start
LH: loop header
LB: loop body
LE: loop exit
PB: predicated region body
PF: predicated region fallthrough
CT: control target
= control target key end

     0   :  { %18 = vsyncpa [#allocation3], 0  ;;  %s1694_s0 = inlined_call_operand.vmem [shape: f32[2,256], index: 0, kind: input, shape index: {}]   ;;  %s1695_s1 = inlined_call_operand.vmem [shape: f32[2,32], index: 1, kind: input, shape index: {}]   ;;  %s1696_s2 = inlined_call_operand.vmem [shape: f32[2,32], index: 2, kind: input, shape index: {}]   ;;  %s1697_s3 = inlined_call_operand.vmem [shape: f32[256,288], index: 3, kind: input, shape index: {}]   ;;  %s1698_s4 = inlined_call_operand.vmem [shape: f32[1,288], index: 4, kind: input, shape index: {}]   ;;  %s1699_s5 = inlined_call_operand.vmem [shape: f32[288,128], index: 5, kind: input, shape index: {}]   ;;  %s1700_s6 = inlined_call_operand.vmem [shape: f32[32,128], index: 6, kind: input, shape index: {}]   ;;  %s1701_s7 = inlined_call_operand.vmem [shape: f32[1,128], index: 7, kind: input, shape index: {}]   ;;  %s1702_s8 = inlined_call_operand.vmem [shape: f32[32,4], index: 8, kind: input, shape index: {}]   ;;  %s1703_s9 = inlined_call_operand.vmem [shape: f32[1,4], index: 9, kind: input, shape index: {}]   ;;  %s1704_s10 = inlined_call_operand.hbm [shape: f32[2,4], index: 10, kind: output, shape index: {0}]   ;;  %s1705_s11 = inlined_call_operand.hbm [shape: f32[2,32], index: 11, kind: output, shape index: {1}]   ;;  %s1706_s12 = inlined_call_operand.hbm [shape: f32[2,32], index: 12, kind: output, shape index: {2}]  }
   0x1   :  { %v42_v0 = vld [vmem:[%s1697_s3 + $0x8] sm:$0xff]  ;;  %v45_v1 = vld [vmem:[%s1697_s3 + $0x20] sm:$0xff]  ;;  %v44_v4 = vld [vmem:[%s1697_s3 + $0x18] sm:$0xff] }
   0x2   :  { %v41_v2 = vld [vmem:[%s1697_s3] sm:$0xff]  ;;  %v877_v3 = vpack.c.bf16 %v45_v1, %v42_v0  ;;  %v48_v5 = vld [vmem:[%s1697_s3 + $0x38] sm:$0xff]  ;;  %v51_v6 = vld [vmem:[%s1697_s3 + $0x50] sm:$0xff] }
   0x3   :  { %v879_v7 = vpack.c.bf16 %v44_v4, %v41_v2  ;;  %v881_v8 = vpack.c.bf16 %v51_v6, %v48_v5  ;;  %v47_v9 = vld [vmem:[%s1697_s3 + $0x30] sm:$0xff]  ;;  %v50_v10 = vld [vmem:[%s1697_s3 + $0x48] sm:$0xff]  ;;  %v57_v12 = vld [vmem:[%s1697_s3 + $0x80] sm:$0xff] }
   0x4   :  { %v54_v11 = vld [vmem:[%s1697_s3 + $0x68] sm:$0xff]  ;;  %878 = vmatprep.subr.bf16.mxu0 %v877_v3  ;;  %v883_v13 = vpack.c.bf16 %v50_v10, %v47_v9  ;;  %v53_v15 = vld [vmem:[%s1697_s3 + $0x60] sm:$0xff]  ;;  %v56_v16 = vld [vmem:[%s1697_s3 + $0x78] sm:$0xff] }
   0x5   :  { %880 = vmatpush1.bf16.msra.mxu0 %v879_v7  ;;  %v885_v14 = vpack.c.bf16 %v57_v12, %v54_v11  ;;  %v60_v17 = vld [vmem:[%s1697_s3 + $0x98] sm:$0xff]  ;;  %v63_v18 = vld [vmem:[%s1697_s3 + $0xb0] sm:$0xff]  ;;  %v887_v19 = vpack.c.bf16 %v56_v16, %v53_v15  ;;  %v62_v22 = vld [vmem:[%s1697_s3 + $0xa8] sm:$0xff] }
   0x6   :  { %882 = vmatprep.subr.bf16.mxu0 %v881_v8  ;;  %v889_v20 = vpack.c.bf16 %v63_v18, %v60_v17  ;;  %v59_v21 = vld [vmem:[%s1697_s3 + $0x90] sm:$0xff]  ;;  %v66_v23 = vld [vmem:[%s1697_s3 + $0xc8] sm:$0xff]  ;;  %v69_v24 = vld [vmem:[%s1697_s3 + $0xe0] sm:$0xff] }
   0x7   :  { %v891_v25 = vpack.c.bf16 %v62_v22, %v59_v21  ;;  %v91_v26 = vld [vmem:[%s1697_s3 + $0x190] sm:$0xff]  ;;  %v94_v27 = vld [vmem:[%s1697_s3 + $0x1a8] sm:$0xff]  ;;  %v893_v29 = vpack.c.bf16 %v69_v24, %v66_v23  ;;  %v65_v30 = vld [vmem:[%s1697_s3 + $0xc0] sm:$0xff] }
   0x8   :  { %v43_v28 = vld [vmem:[%s1697_s3 + $0x10] sm:$0xff]  ;;  %v68_v31 = vld [vmem:[%s1697_s3 + $0xd8] sm:$0xff]  ;;  %v941_v32 = vpack.c.bf16 %v94_v27, %v91_v26  ;;  %v46_v33 = vld [vmem:[%s1697_s3 + $0x28] sm:$0xff] }
   0x9   :  { %884 = vmatpush1.bf16.msra.mxu0 %v883_v13  ;;  %v72_v34 = vld [vmem:[%s1697_s3 + $0xf8] sm:$0xff]  ;;  %v75_v35 = vld [vmem:[%s1697_s3 + $0x110] sm:$0xff]  ;;  %v943_v36 = vpack.c.bf16 %v46_v33, %v43_v28  ;;  %v97_v37 = vld [vmem:[%s1697_s3 + $0x1c0] sm:$0xff]  ;;  %v895_v41 = vpack.c.bf16 %v68_v31, %v65_v30 }
   0xa   :  { %886 = vmatprep.subr.bf16.mxu0 %v885_v14  ;;  %942 = vmatprep.subr.bf16.mxu1 %v941_v32  ;;  %v100_v38 = vld [vmem:[%s1697_s3 + $0x1d8] sm:$0xff]  ;;  %v49_v39 = vld [vmem:[%s1697_s3 + $0x40] sm:$0xff]  ;;  %v71_v42 = vld [vmem:[%s1697_s3 + $0xf0] sm:$0xff]  ;;  %v897_v46 = vpack.c.bf16 %v75_v35, %v72_v34 }
   0xb   :  { %v52_v40 = vld [vmem:[%s1697_s3 + $0x58] sm:$0xff]  ;;  %v74_v43 = vld [vmem:[%s1697_s3 + $0x108] sm:$0xff]  ;;  %944 = vmatpush3.bf16.msra.mxu1 %v943_v36  ;;  %v945_v44 = vpack.c.bf16 %v100_v38, %v97_v37  ;;  %v103_v48 = vld [vmem:[%s1697_s3 + $0x1f0] sm:$0xff] }
   0xc   :  { %v947_v45 = vpack.c.bf16 %v52_v40, %v49_v39  ;;  %v78_v47 = vld [vmem:[%s1697_s3 + $0x128] sm:$0xff]  ;;  %v81_v50 = vld [vmem:[%s1697_s3 + $0x140] sm:$0xff]  ;;  %v55_v52 = vld [vmem:[%s1697_s3 + $0x70] sm:$0xff]  ;;  %v899_v54 = vpack.c.bf16 %v74_v43, %v71_v42 }
   0xd   :  { %888 = vmatpush1.bf16.msra.mxu0 %v887_v19  ;;  %v106_v49 = vld [vmem:[%s1697_s3 + $0x208] sm:$0xff]  ;;  %946 = vmatprep.subr.bf16.mxu1 %v945_v44  ;;  %v77_v55 = vld [vmem:[%s1697_s3 + $0x120] sm:$0xff]  ;;  %v112_v58 = vld [vmem:[%s1697_s3 + $0x238] sm:$0xff]  ;;  %v901_v59 = vpack.c.bf16 %v81_v50, %v78_v47 }
   0xe   :  { %890 = vmatprep.subr.bf16.mxu0 %v889_v20  ;;  %v949_v51 = vpack.c.bf16 %v106_v49, %v103_v48  ;;  %v58_v53 = vld [vmem:[%s1697_s3 + $0x88] sm:$0xff]  ;;  %v109_v57 = vld [vmem:[%s1697_s3 + $0x220] sm:$0xff]  ;;  %v80_v60 = vld [vmem:[%s1697_s3 + $0x138] sm:$0xff] }
   0xf   :  { %948 = vmatpush3.bf16.msra.mxu1 %v947_v45  ;;  %v951_v56 = vpack.c.bf16 %v58_v53, %v55_v52  ;;  %v953_v61 = vpack.c.bf16 %v112_v58, %v109_v57  ;;  %v61_v62 = vld [vmem:[%s1697_s3 + $0xa0] sm:$0xff]  ;;  %v64_v63 = vld [vmem:[%s1697_s3 + $0xb8] sm:$0xff]  ;;  %v87_v1 = vld [vmem:[%s1697_s3 + $0x170] sm:$0xff]  ;;  %v903_v4 = vpack.c.bf16 %v80_v60, %v77_v55 }
  0x10   :  { %950 = vmatprep.subr.bf16.mxu1 %v949_v51  ;;  %v84_v0 = vld [vmem:[%s1697_s3 + $0x158] sm:$0xff]  ;;  %v115_v2 = vld [vmem:[%s1697_s3 + $0x250] sm:$0xff]  ;;  %v118_v3 = vld [vmem:[%s1697_s3 + $0x268] sm:$0xff]  ;;  %v955_v7 = vpack.c.bf16 %v64_v63, %v61_v62 }
  0x11   :  { %892 = vmatpush1.bf16.msra.mxu0 %v891_v25  ;;  %v83_v5 = vld [vmem:[%s1697_s3 + $0x150] sm:$0xff]  ;;  %v86_v6 = vld [vmem:[%s1697_s3 + $0x168] sm:$0xff]  ;;  %v905_v8 = vpack.c.bf16 %v87_v1, %v84_v0  ;;  %v957_v10 = vpack.c.bf16 %v118_v3, %v115_v2  ;;  %v93_v13 = vld [vmem:[%s1697_s3 + $0x1a0] sm:$0xff] }
  0x12   :  { %894 = vmatprep.subr.bf16.mxu0 %v893_v29  ;;  %v90_v9 = vld [vmem:[%s1697_s3 + $0x188] sm:$0xff]  ;;  %v67_v11 = vld [vmem:[%s1697_s3 + $0xd0] sm:$0xff]  ;;  %v121_v14 = vld [vmem:[%s1697_s3 + $0x280] sm:$0xff]  ;;  %v907_v16 = vpack.c.bf16 %v86_v6, %v83_v5 }
  0x13   :  { %952 = vmatpush3.bf16.msra.mxu1 %v951_v56  ;;  %v70_v12 = vld [vmem:[%s1697_s3 + $0xe8] sm:$0xff]  ;;  %v124_v15 = vld [vmem:[%s1697_s3 + $0x298] sm:$0xff]  ;;  %v89_v17 = vld [vmem:[%s1697_s3 + $0x180] sm:$0xff]  ;;  %v909_v20 = vpack.c.bf16 %v93_v13, %v90_v9 }
  0x14   :  { %954 = vmatprep.subr.bf16.mxu1 %v953_v61  ;;  %v92_v18 = vld [vmem:[%s1697_s3 + $0x198] sm:$0xff]  ;;  %v959_v19 = vpack.c.bf16 %v70_v12, %v67_v11  ;;  %v961_v22 = vpack.c.bf16 %v124_v15, %v121_v14  ;;  %v73_v23 = vld [vmem:[%s1697_s3 + $0x100] sm:$0xff]  ;;  %v99_v25 = vld [vmem:[%s1697_s3 + $0x1d0] sm:$0xff] }
  0x15   :  { %896 = vmatpush1.bf16.msra.mxu0 %v895_v41  ;;  %v96_v21 = vld [vmem:[%s1697_s3 + $0x1b8] sm:$0xff]  ;;  %v127_v26 = vld [vmem:[%s1697_s3 + $0x2b0] sm:$0xff]  ;;  %v130_v27 = vld [vmem:[%s1697_s3 + $0x2c8] sm:$0xff]  ;;  %v911_v29 = vpack.c.bf16 %v92_v18, %v89_v17 }
  0x16   :  { %898 = vmatprep.subr.bf16.mxu0 %v897_v46  ;;  %v76_v24 = vld [vmem:[%s1697_s3 + $0x118] sm:$0xff]  ;;  %v1389_v28 = vld.sshfl [vmem:[%s1694_s0] sm:$0x33 pattern:$0x76325410]  ;;  %v95_v30 = vld [vmem:[%s1697_s3 + $0x1b0] sm:$0xff]  ;;  %v913_v34 = vpack.c.bf16 %v99_v25, %v96_v21  ;;  %v965_v36 = vpack.c.bf16 %v130_v27, %v127_v26 }
  0x17   :  { %956 = vmatpush3.bf16.msra.mxu1 %v955_v7  ;;  %v98_v31 = vld [vmem:[%s1697_s3 + $0x1c8] sm:$0xff]  ;;  %v963_v32 = vpack.c.bf16 %v76_v24, %v73_v23  ;;  %v162_v33 = vcombine.high %v1389_v28, %v1389_v28  ;;  %v79_v37 = vld [vmem:[%s1697_s3 + $0x130] sm:$0xff]  ;;  %v105_v39 = vld [vmem:[%s1697_s3 + $0x200] sm:$0xff] }
  0x18   :  { %958 = vmatprep.subr.bf16.mxu1 %v957_v10  ;;  %v102_v35 = vld [vmem:[%s1697_s3 + $0x1e8] sm:$0xff]  ;;  %v133_v40 = vld [vmem:[%s1697_s3 + $0x2e0] sm:$0xff]  ;;  %v136_v41 = vld [vmem:[%s1697_s3 + $0x2f8] sm:$0xff]  ;;  %v915_v42 = vpack.c.bf16 %v98_v31, %v95_v30 }
  0x19   :  { %900 = vmatpush1.bf16.msra.mxu0 %v899_v54  ;;  %v82_v38 = vld [vmem:[%s1697_s3 + $0x148] sm:$0xff]  ;;  %229 = vmatprep.mubr.f32.mxu0 %v162_v33  ;;  %v101_v43 = vld [vmem:[%s1697_s3 + $0x1e0] sm:$0xff]  ;;  %v917_v45 = vpack.c.bf16 %v105_v39, %v102_v35  ;;  %v104_v46 = vld [vmem:[%s1697_s3 + $0x1f8] sm:$0xff]  ;;  %v969_v47 = vpack.c.bf16 %v136_v41, %v133_v40 }
  0x1a   :  { %902 = vmatprep.subr.bf16.mxu0 %v901_v59  ;;  %300 = vmatprep.mubr.f32.mxu1 %v162_v33  ;;  %v967_v44 = vpack.c.bf16 %v82_v38, %v79_v37  ;;  %v85_v48 = vld [vmem:[%s1697_s3 + $0x160] sm:$0xff]  ;;  %v88_v49 = vld [vmem:[%s1697_s3 + $0x178] sm:$0xff]  ;;  %v111_v51 = vld [vmem:[%s1697_s3 + $0x230] sm:$0xff] }
  0x1b   :  { %960 = vmatpush3.bf16.msra.mxu1 %v959_v19  ;;  %v108_v50 = vld [vmem:[%s1697_s3 + $0x218] sm:$0xff] }
  0x1c   :  { %962 = vmatprep.subr.bf16.mxu1 %v961_v22 }
  0x1d   :  { %904 = vmatpush1.bf16.msra.mxu0 %v903_v4 }
  0x1e   :  { %906 = vmatprep.subr.bf16.mxu0 %v905_v8 }
  0x1f   :  { %964 = vmatpush3.bf16.msra.mxu1 %v963_v32 }
  0x20   :  { %966 = vmatprep.subr.bf16.mxu1 %v965_v36 }
  0x21   :  { %908 = vmatpush1.bf16.msra.mxu0 %v907_v16 }
  0x22   :  { %910 = vmatprep.subr.bf16.mxu0 %v909_v20 }
  0x25   :  { %912 = vmatpush1.bf16.msra.mxu0 %v911_v29 }
  0x26   :  { %914 = vmatprep.subr.bf16.mxu0 %v913_v34 }
  0x27   :  { %19 = vsyncpa [#allocation5], 0  ;;  %v919_v52 = vpack.c.bf16 %v104_v46, %v101_v43  ;;  %v107_v53 = vld [vmem:[%s1697_s3 + $0x210] sm:$0xff]  ;;  %968 = vmatpush3.bf16.msra.mxu1 %v967_v44  ;;  %v971_v54 = vpack.c.bf16 %v88_v49, %v85_v48  ;;  %v921_v55 = vpack.c.bf16 %v111_v51, %v108_v50  ;;  %v110_v56 = vld [vmem:[%s1697_s3 + $0x228] sm:$0xff]  ;;  %v1120_v3 = vmov 0.0|0.0   ;;  %s1123_s29 = smov 64  }
  0x28   :  { %970 = vmatprep.subr.bf16.mxu1 %v969_v47  ;;  %v346_v57 = vld [vmem:[%s1700_s6] sm:$0xff]  ;;  %v347_v58 = vld [vmem:[%s1700_s6 + $0x8] sm:$0xff]  ;;  %v923_v61 = vpack.c.bf16 %v110_v56, %v107_v53  ;;  %v116_v63 = vld [vmem:[%s1697_s3 + $0x258] sm:$0xff]  ;;  %vm1121_vm0 = vmmov 0   ;;  %v1122_v19 = vmov 0.0   ;;  %vm350_vm1 = vcmask 261120  }
  0x29   :  { %916 = vmatpush1.bf16.msra.mxu0 %v915_v42  ;;  %v114_v59 = vld [vmem:[%s1697_s3 + $0x248] sm:$0xff]  ;;  %v117_v60 = vld [vmem:[%s1697_s3 + $0x260] sm:$0xff]  ;;  %v974_v0 = vpack.c.bf16 %v347_v58, %v346_v57  ;;  %v120_v2 = vld [vmem:[%s1697_s3 + $0x278] sm:$0xff]  ;;  %vm608_vm2 = vcmask 254976   ;;  %vm698_vm3 = vcmask 25600  }
  0x2a   :  { %918 = vmatprep.subr.bf16.mxu0 %v917_v45  ;;  %v113_v62 = vld [vmem:[%s1697_s3 + $0x240] sm:$0xff]  ;;  %v925_v1 = vpack.c.bf16 %v117_v60, %v114_v59  ;;  %v348_v4 = vld [vmem:[%s1700_s6 + $0x10] sm:$0xff]  ;;  %v349_v5 = vld [vmem:[%s1700_s6 + $0x18] sm:$0xff] }
  0x2b   :  { %972 = vmatpush3.bf16.msra.mxu1 %v971_v54  ;;  %v123_v6 = vld [vmem:[%s1697_s3 + $0x290] sm:$0xff]  ;;  %v325_v7 = vld [vmem:[%s1699_s5 + $0x80] sm:$0xff]  ;;  %v326_v8 = vld [vmem:[%s1699_s5 + $0x88] sm:$0xff]  ;;  %v927_v9 = vpack.c.bf16 %v116_v63, %v113_v62  ;;  %v977_v12 = vpack.c.bf16 %v349_v5, %v348_v4 }
  0x2c   :  { %973 = vmatprep.subr.bf16.mxu1 %v1120_v3  ;;  %v119_v10 = vld [vmem:[%s1697_s3 + $0x270] sm:$0xff]  ;;  %v122_v11 = vld [vmem:[%s1697_s3 + $0x288] sm:$0xff]  ;;  %v929_v13 = vpack.c.bf16 %v123_v6, %v120_v2  ;;  %v979_v15 = vpack.c.bf16 %v326_v8, %v325_v7  ;;  %v309_v16 = vld [vmem:[%s1699_s5] sm:$0xff] }
  0x2d   :  { %920 = vmatpush1.bf16.msra.mxu0 %v919_v52  ;;  %v126_v14 = vld [vmem:[%s1697_s3 + $0x2a8] sm:$0xff]  ;;  %v129_v18 = vld [vmem:[%s1697_s3 + $0x2c0] sm:$0xff]  ;;  %v327_v20 = vld [vmem:[%s1699_s5 + $0x90] sm:$0xff]  ;;  %v931_v22 = vpack.c.bf16 %v122_v11, %v119_v10 }
  0x2e   :  { %922 = vmatprep.subr.bf16.mxu0 %v921_v55  ;;  %301 = vmatmul.mubr.f32.vlgmr.msra.gmra.mrb[0].mxu1 %v1389_v28  ;;  %v310_v17 = vld [vmem:[%s1699_s5 + $0x8] sm:$0xff]  ;;  %v328_v21 = vld [vmem:[%s1699_s5 + $0x98] sm:$0xff]  ;;  %v125_v23 = vld [vmem:[%s1697_s3 + $0x2a0] sm:$0xff]  ;;  %v933_v27 = vpack.c.bf16 %v129_v18, %v126_v14  ;;  %v139_v18 = vlaneseq }
  0x2f   :  { %975 = vmatpush3.bf16.msra.mxu1 %v974_v0  ;;  %852 = vmatprep.mubr.msk.f32.mxu1 %vm1121_vm0, %v1122_v19  ;;  %v128_v24 = vld [vmem:[%s1697_s3 + $0x2b8] sm:$0xff]  ;;  %v345_v25 = vld [vmem:[%s1695_s1] sm:$0x3]  ;;  %v981_v26 = vpack.c.bf16 %v310_v17, %v309_v16  ;;  %v983_v30 = vpack.c.bf16 %v328_v21, %v327_v20  ;;  %v311_v31 = vld [vmem:[%s1699_s5 + $0x10] sm:$0xff]  ;;  %s1124_s1 = smov 32  }
  0x30   :  { %976 = vmatprep.subr.bf16.mxu1 %v1120_v3  ;;  %v132_v29 = vld [vmem:[%s1697_s3 + $0x2d8] sm:$0xff]  ;;  %v135_v33 = vld [vmem:[%s1697_s3 + $0x2f0] sm:$0xff]  ;;  %v329_v34 = vld [vmem:[%s1699_s5 + $0xa0] sm:$0xff]  ;;  %v935_v36 = vpack.c.bf16 %v128_v24, %v125_v23  ;;  %v140_v20 = vshrl.u32 %v139_v18, 7 }
  0x31   :  { %924 = vmatpush1.bf16.msra.mxu0 %v923_v61  ;;  %v312_v32 = vld [vmem:[%s1699_s5 + $0x18] sm:$0xff]  ;;  %v330_v35 = vld [vmem:[%s1699_s5 + $0xa8] sm:$0xff]  ;;  %v131_v37 = vld [vmem:[%s1697_s3 + $0x2d0] sm:$0xff]  ;;  %v937_v39 = vpack.c.bf16 %v135_v33, %v132_v29 }
  0x32   :  { %926 = vmatprep.subr.bf16.mxu0 %v925_v1  ;;  %v985_v38 = vpack.c.bf16 %v312_v32, %v311_v31  ;;  %v134_v40 = vld [vmem:[%s1697_s3 + $0x2e8] sm:$0xff]  ;;  %v987_v41 = vpack.c.bf16 %v330_v35, %v329_v34  ;;  %v313_v42 = vld [vmem:[%s1699_s5 + $0x20] sm:$0xff]  ;;  %v331_v44 = vld [vmem:[%s1699_s5 + $0xb0] sm:$0xff]  ;;  %v149_v21 = vsub.s32 2, %v140_v20  ;;  %v141_v31 = vsub.s32 0, %v140_v20 }
  0x33   :  { %978 = vmatpush3.bf16.msra.mxu1 %v977_v12  ;;  %v314_v43 = vld [vmem:[%s1699_s5 + $0x28] sm:$0xff]  ;;  %v332_v45 = vld [vmem:[%s1699_s5 + $0xb8] sm:$0xff]  ;;  %v939_v46 = vpack.c.bf16 %v134_v40, %v131_v37  ;;  %v315_v49 = vld [vmem:[%s1699_s5 + $0x30] sm:$0xff]  ;;  %v145_v32 = vsub.s32 1, %v140_v20 }
  0x34   :  { %980 = vmatprep.subr.bf16.mxu1 %v979_v15  ;;  %v989_v47 = vpack.c.bf16 %v314_v43, %v313_v42  ;;  %v991_v48 = vpack.c.bf16 %v332_v45, %v331_v44  ;;  %v316_v50 = vld [vmem:[%s1699_s5 + $0x38] sm:$0xff]  ;;  %v333_v52 = vld [vmem:[%s1699_s5 + $0xc0] sm:$0xff]  ;;  %v334_v53 = vld [vmem:[%s1699_s5 + $0xc8] sm:$0xff] }
  0x35   :  { %928 = vmatpush1.bf16.msra.mxu0 %v927_v9  ;;  %v993_v51 = vpack.c.bf16 %v316_v50, %v315_v49  ;;  %v995_v54 = vpack.c.bf16 %v334_v53, %v333_v52  ;;  %v317_v55 = vld [vmem:[%s1699_s5 + $0x40] sm:$0xff]  ;;  %v335_v57 = vld [vmem:[%s1699_s5 + $0xd0] sm:$0xff]  ;;  %v336_v58 = vld [vmem:[%s1699_s5 + $0xd8] sm:$0xff] }
  0x36   :  { %930 = vmatprep.subr.bf16.mxu0 %v929_v13  ;;  %853 = vmatmul.mubr.msk.f32.vlgmr.msra.gmra.mrb[2].mxu1 %vm350_vm1, %v345_v25  ;;  %v999_v59 = vpack.c.bf16 %v336_v58, %v335_v57  ;;  %v319_v60 = vld [vmem:[%s1699_s5 + $0x50] sm:$0xff]  ;;  %v320_v61 = vld [vmem:[%s1699_s5 + $0x58] sm:$0xff]  ;;  %v337_v63 = vld [vmem:[%s1699_s5 + $0xe0] sm:$0xff] }
  0x37   :  { %982 = vmatpush3.bf16.msra.mxu1 %v981_v26  ;;  %v1001_v62 = vpack.c.bf16 %v320_v61, %v319_v60  ;;  %v338_v0 = vld [vmem:[%s1699_s5 + $0xe8] sm:$0xff]  ;;  %v321_v1 = vld [vmem:[%s1699_s5 + $0x60] sm:$0xff]  ;;  %v339_v5 = vld [vmem:[%s1699_s5 + $0xf0] sm:$0xff] }
  0x38   :  { %984 = vmatprep.subr.bf16.mxu1 %v983_v30  ;;  %v1003_v2 = vpack.c.bf16 %v338_v0, %v337_v63  ;;  %v322_v4 = vld [vmem:[%s1699_s5 + $0x68] sm:$0xff]  ;;  %v340_v6 = vld [vmem:[%s1699_s5 + $0xf8] sm:$0xff]  ;;  %v341_v9 = vld [vmem:[%s1699_s5 + $0x100] sm:$0xff] }
  0x39   :  { %932 = vmatpush1.bf16.msra.mxu0 %v931_v22  ;;  %v1005_v7 = vpack.c.bf16 %v322_v4, %v321_v1  ;;  %v1007_v8 = vpack.c.bf16 %v340_v6, %v339_v5  ;;  %v342_v10 = vld [vmem:[%s1699_s5 + $0x108] sm:$0xff]  ;;  %v323_v11 = vld [vmem:[%s1699_s5 + $0x70] sm:$0xff]  ;;  %v324_v13 = vld [vmem:[%s1699_s5 + $0x78] sm:$0xff] }
  0x3a   :  { %934 = vmatprep.subr.bf16.mxu0 %v933_v27  ;;  %v1012_v12 = vpack.c.bf16 %v342_v10, %v341_v9  ;;  %v1009_v14 = vpack.c.bf16 %v324_v13, %v323_v11  ;;  %v343_v15 = vld [vmem:[%s1699_s5 + $0x110] sm:$0xff]  ;;  %v344_v16 = vld [vmem:[%s1699_s5 + $0x118] sm:$0xff]  ;;  %v137_v22 = vld [vmem:[%s1698_s4] sm:$0x7] }
  0x3b   :  { %986 = vmatpush3.bf16.msra.mxu1 %v985_v38  ;;  %v1015_v17 = vpack.c.bf16 %v344_v16, %v343_v15  ;;  %v150_v24 = vrot.slane %v137_v22, %v149_v21  ;;  %v142_v34 = vrot.slane %v137_v22, %v141_v31  ;;  %v146_v35 = vrot.slane %v137_v22, %v145_v32  ;;  %v615_v61 = vld [vmem:[%s1702_s8] sm:$0xff]  ;;  %v617_v63 = vld [vmem:[%s1702_s8 + $0x10] sm:$0xff]  ;;  %v618_v1 = vld [vmem:[%s1702_s8 + $0x18] sm:$0xff] }
  0x3c   :  { %988 = vmatprep.subr.bf16.mxu1 %v987_v41 }
  0x3d   :  { %936 = vmatpush1.bf16.msra.mxu0 %v935_v36 }
  0x3e   :  { %938 = vmatprep.subr.bf16.mxu0 %v937_v39 }
  0x3f   :  { %990 = vmatpush3.bf16.msra.mxu1 %v989_v47 }
  0x40   :  { %992 = vmatprep.subr.bf16.mxu1 %v991_v48 }
  0x41   :  { %940 = vmatpush1.bf16.msra.mxu0 %v939_v46 }
  0x42   :  { %1011 = vmatprep.subr.bf16.mxu0 %v1120_v3 }
  0x43   :  { %994 = vmatpush3.bf16.msra.mxu1 %v993_v51  ;;  %v582_v51 = vld [vmem:[%s1696_s2] sm:$0x3] }
  0x44   :  { %230 = vmatmul.mubr.f32.vlgmr.msra.gmra.mrb[0].mxu0 %v1389_v28  ;;  %v318_v28 = vld [vmem:[%s1699_s5 + $0x48] sm:$0xff]  ;;  %996 = vmatprep.subr.bf16.mxu1 %v995_v54 }
  0x45   :  { %863 = vmatprep.mubr.msk.f32.mxu0 %vm1121_vm0, %v1122_v19  ;;  %v997_v56 = vpack.c.bf16 %v318_v28, %v317_v55  ;;  %1013 = vmatpush3.bf16.msra.mxu0 %v1012_v12 }
  0x46   :  { %1014 = vmatprep.subr.bf16.mxu0 %v1120_v3 }
  0x47   :  { %998 = vmatpush3.bf16.msra.mxu1 %v997_v56 }
  0x48   :  { %1000 = vmatprep.subr.bf16.mxu1 %v999_v59 }
  0x49   :  { %1016 = vmatpush3.bf16.msra.mxu0 %v1015_v17 }
  0x4a   :  { %1017 = vmatprep.subr.bf16.mxu0 %v1120_v3 }
  0x4b   :  { %1002 = vmatpush3.bf16.msra.mxu1 %v1001_v62  ;;  %v616_v62 = vld [vmem:[%s1702_s8 + $0x8] sm:$0xff]  ;;  %s1125_s8 = smov [#allocation4]  }
  0x4c   :  { %1004 = vmatprep.subr.bf16.mxu1 %v1003_v2  ;;  %v1018_v0 = vpack.c.bf16 %v616_v62, %v615_v61  ;;  %v1021_v2 = vpack.c.bf16 %v618_v1, %v617_v63  ;;  %s727_s21 = sshll.u32 %s1125_s8, 4  ;;  %s728_s21 = int_to_ptr.vmem [resolvable:$true] %s727_s21 }
  0x4d   :  { %s1050_s22 = scalar_lea.vmem %s728_s21, 32  ;;  %p1055_p1 = scmp.lt.s32.totalorder %s728_s21, %s728_s21 }
  0x4e   :  { %p1051_p0 = scmp.ne.s32.totalorder %s728_s21, %s1050_s22  ;;  %p1056_p2 = scmp.lt.s32.totalorder %s1050_s22, %s1050_s22 }
  0x4f   :  { %1006 = vmatpush3.bf16.msra.mxu1 %v1005_v7 }
  0x50   :  { %1008 = vmatprep.subr.bf16.mxu1 %v1007_v8  ;;  %v757_v8 = vld [vmem:[%s1703_s9] ss:$0 sm:$0xff]  ;;  %p1057_p3 = por %p1056_p2, %p1055_p1 }
  0x52   :  { %p1058_p4 = pnand %p1057_p3, %p1051_p0 }
  0x53   :  { %1010 = vmatpush3.bf16.msra.mxu1 %v1009_v14 }
 0x101   :  { %v791_v23 = vpop.f32.mrb[0].mxu1 }
 0x102   :  { %v792_v25 = vpop.f32.mrb[1].mxu1 }
 0x103   :  { %v793_v26 = vadd.f32 %v792_v25, %v791_v23 }
 0x105   :  { %v303_v27 = vadd.f32 %v793_v26, %v150_v24 }
 0x107   :  { %1032 = vtanh.f32 %v303_v27 }
 0x109   :  { %v420_v29 = vpop.f32.mrb[2].mxu1 }
 0x10a   :  { %v854_v30 = vpop.f32.mrb[3].mxu1 }
 0x111   :  { %v1033_v33 = vpop.eup %1032 }
 0x112   :  { %864 = vmatmul.mubr.msk.f32.vlgmr.msra.gmra.mrb[2].mxu0 %vm350_vm1, %v1033_v33 }
 0x113   :  { %874 = vmatprep.mubr.msk.f32.mxu0 %vm1121_vm0, %v1122_v19  ;;  %v755_v19 = vld [vmem:[%s1701_s7] ss:$0 sm:$0xff]  ;;  %1019 = vmatpush3.bf16.msra.mxu0 %v1018_v0 }
 0x114   :  { %1020 = vmatprep.subr.bf16.mxu0 %v1120_v3 }
 0x117   :  { %v231_v36 = vpop.f32.mrb[0].mxu0  ;;  %1022 = vmatpush3.bf16.msra.mxu0 %v1021_v2 }
 0x118   :  { %v232_v37 = vadd.f32 %v231_v36, %v142_v34  ;;  %v233_v38 = vpop.f32.mrb[1].mxu0 }
 0x119   :  { %v234_v39 = vadd.f32 %v233_v38, %v146_v35 }
 0x11b   :  { %1034 = vtanh.f32 %v234_v39 }
 0x11c   :  { %1036 = vtanh.f32 %v232_v37 }
 0x125   :  { %v1035_v40 = vpop.eup %1034 }
 0x126   :  { %v1037_v41 = vpop.eup %1036  ;;  %491 = vmatprep.mubr.f32.mxu1 %v1035_v40 }
 0x127   :  { %492 = vmatmul.mubr.f32.vlgmr.msra.gmra.mrb[4].mxu1 %v1037_v41 }
 0x1e5   :  { %v563_v42 = vpop.f32.mrb[2].mxu0 }
 0x1e6   :  { %v865_v43 = vpop.f32.mrb[3].mxu0 }
 0x1fa   :  { %v831_v44 = vpop.f32.mrb[4].mxu1 }
 0x1fb   :  { %v832_v45 = vpop.f32.mrb[5].mxu1 }
 0x1fc   :  { %v833_v46 = vadd.f32 %v832_v45, %v831_v44 }
 0x1fe   :  { %v494_v47 = vadd.f32 %v833_v46, %v420_v29 }
 0x200   :  { %v564_v48 = vadd.f32 %v563_v42, %v494_v47 }
 0x202   :  { %v574_v49 = vadd.f32 %v755_v19, %v564_v48 }
 0x204   :  { %1038 = vtanh.f32 %v574_v49  ;;  %v756_v52 = vmul.f32 -1.442695, %v574_v49 }
 0x206   :  { %1040 = vpow2.f32 %v756_v52 }
 0x20e   :  { %v1039_v50 = vpop.eup %1038 }
 0x20f   :  { %589 = vrot.lane.b32.xlu0 %v1039_v50, %s1123_s29 }
 0x210   :  { %v1041_v53 = vpop.eup %1040 }
 0x211   :  { %v578_v54 = vadd.f32 1.0, %v1041_v53 }
 0x213   :  { %584 = vrot.lane.b32.xlu0 %v582_v51, %s1124_s1  ;;  %1042 = vrcp.f32 %v578_v54 }
 0x21d   :  { %v1043_v55 = vpop.eup %1042 }
 0x281   :  { %v590_v28 = vpop.permute.xlu0 %589 }
 0x282   :  { %v592_v56 = vmul.f32 %v1043_v55, %v590_v28 }
 0x284   :  { %594 = vrot.lane.b32.xlu1 %v592_v56, %s1124_s1 }
 0x285   :  { %v585_v57 = vpop.permute.xlu0 %584 }
 0x286   :  { %v587_v58 = vmul.f32 %v1043_v55, %v585_v57 }
 0x2f6   :  { %v595_v59 = vpop.permute.xlu1 %594 }
 0x2f7   :  { %v597_v60 = vadd.f32 %v595_v59, %v587_v58 }
 0x2f9   :  { %1044 = vtanh.f32 %v597_v60 }
 0x303   :  { %v1045_v4 = vpop.eup %1044 }
 0x304   :  { %600 = vrot.lane.b32.xlu1 %v1045_v4, %s1123_s29 }
 0x376   :  { %v601_v5 = vpop.permute.xlu1 %600 }
 0x377   :  { %v603_v6 = vmul.f32 %v1043_v55, %v601_v5 }
 0x379   :  { %611 = vrot.lane.b32.xlu0 %v603_v6, %s1124_s1 }
 0x3eb   :  { %v612_v7 = vpop.permute.xlu0 %611 }
 0x3ec   :  { %875 = vmatmul.mubr.msk.f32.vlgmr.msra.gmra.mrb[4].mxu0 %vm350_vm1, %v612_v7  ;;  %614 = vst.msk [vmem:[#allocation4] sm:$0x3] %vm608_vm2, %v612_v7 }
 0x4bf   :  { %v694_v9 = vpop.f32.mrb[4].mxu0 }
 0x4c0   :  { %v695_v10 = vadd.f32 %v757_v8, %v694_v9  ;;  %v876_v3 = vpop.f32.mrb[5].mxu0 }
 0x4c2   :  { %v699_v11 = vsel %vm698_vm3, %v695_v10, -inf }
 0x4c3   :  { %700 = vmax.xlane.f32.xlu1 %v699_v11 }
 0x550   :  { %v701_v12 = vpop.xlane.xlu1 %700 }
 0x551   :  { %v702_v13 = vsub.f32 %v695_v10, %v701_v12 }
 0x553   :  { %v703_v14 = vmul.f32 1.442695, %v702_v13 }
 0x555   :  { %1046 = vpow2.f32 %v703_v14 }
 0x55f   :  { %v1047_v15 = vpop.eup %1046 }
 0x560   :  { %v705_v16 = vsel %vm698_vm3, %v1047_v15, 0.0 }
 0x561   :  { %706 = vadd.xlane.f32.xlu0 %v705_v16 }
 0x562   :  { %1061 = shalt.err (!%p1058_p4)
}
 0x563   :  { %s1062_s24 = scalar_lea.hbm %s1705_s11, 32 }
 0x564   :  { %p1063_p5 = scmp.ne.s32.totalorder %s1705_s11, %s1062_s24  ;;  %p1066_p6 = scmp.lt.u32.totalorder %s1062_s24, %s1705_s11 }
 0x566   :  { %p1068_p7 = pnand %p1066_p6, %p1063_p5 }
 0x568   :  { %1071 = shalt.err (!%p1068_p7)
}
 0x569   :  { %730 = dma.vmem_to_hbm [thread:$0]  %s728_s21, 32, %s1705_s11, [#allocation5]  }
 0x56a   :  { %s1126_s4 = smov 96   ;;  %s1127_s5 = smov [#allocation6]  }
 0x56b   :  { %s737_s29 = sshll.u32 %s1127_s5, 4  ;;  %s738_s29 = int_to_ptr.vmem [resolvable:$true] %s737_s29 }
 0x56c   :  { %s1072_s0 = scalar_lea.vmem %s738_s29, 32  ;;  %p1077_p9 = scmp.lt.s32.totalorder %s738_s29, %s738_s29 }
 0x56d   :  { %p1073_p8 = scmp.ne.s32.totalorder %s738_s29, %s1072_s0  ;;  %p1078_p10 = scmp.lt.s32.totalorder %s1072_s0, %s1072_s0 }
 0x56f   :  { %p1079_p11 = por %p1078_p10, %p1077_p9 }
 0x571   :  { %p1080_p12 = pnand %p1079_p11, %p1073_p8 }
 0x577   :  { %605 = vrot.lane.b32.xlu0 %v597_v60, %s1126_s4 }
 0x5ee   :  { %v707_v17 = vpop.xlane.xlu0 %706 }
 0x5ef   :  { %1048 = vrcp.f32 %v707_v17 }
 0x5f2   :  { %v606_v18 = vpop.permute.xlu0 %605 }
 0x5f3   :  { %609 = vst.msk [vmem:[#allocation6] sm:$0x3] %vm608_vm2, %v606_v18 }
 0x5f4   :  { %1083 = shalt.err (!%p1080_p12)
}
 0x5f5   :  { %s1084_s11 = scalar_lea.hbm %s1706_s12, 32 }
 0x5f6   :  { %p1085_p13 = scmp.ne.s32.totalorder %s1706_s12, %s1084_s11  ;;  %p1088_p0 = scmp.lt.u32.totalorder %s1084_s11, %s1706_s12 }
 0x5f8   :  { %p1090_p1 = pnand %p1088_p0, %p1085_p13 }
 0x5fa   :  { %1093 = shalt.err (!%p1090_p1)
}
 0x5fb   :  { %740 = dma.vmem_to_hbm [thread:$0]  %s738_s29, 32, %s1706_s12, [#allocation5]   ;;  %v1049_v20 = vpop.eup %1048 }
 0x5fc   :  { %s1128_s17 = smov [#allocation2]   ;;  %v709_v21 = vmul.f32 %v1049_v20, %v1047_v15 }
 0x5fd   :  { %s717_s18 = sshll.u32 %s1128_s17, 4  ;;  %s718_s18 = int_to_ptr.vmem [resolvable:$true] %s717_s18 }
 0x5fe   :  { %710 = vst.msk [vmem:[#allocation2] sm:$0x3] %vm698_vm3, %v709_v21  ;;  %s1094_s19 = scalar_lea.vmem %s718_s18, 32  ;;  %p1099_p3 = scmp.lt.s32.totalorder %s718_s18, %s718_s18 }
 0x5ff   :  { %p1095_p2 = scmp.ne.s32.totalorder %s718_s18, %s1094_s19  ;;  %p1100_p4 = scmp.lt.s32.totalorder %s1094_s19, %s1094_s19 }
 0x601   :  { %p1101_p5 = por %p1100_p4, %p1099_p3 }
 0x603   :  { %p1102_p6 = pnand %p1101_p5, %p1095_p2 }
 0x605   :  { %1105 = shalt.err (!%p1102_p6)
}
 0x606   :  { %s1106_s21 = scalar_lea.hbm %s1704_s10, 32 }
 0x607   :  { %p1107_p7 = scmp.ne.s32.totalorder %s1704_s10, %s1106_s21  ;;  %p1110_p8 = scmp.lt.u32.totalorder %s1106_s21, %s1704_s10 }
 0x609   :  { %p1112_p9 = pnand %p1110_p8, %p1107_p7 }
 0x60b   :  { %1115 = shalt.err (!%p1112_p9)
}
 0x60c   :  { %720 = dma.vmem_to_hbm [thread:$0]  %s718_s18, 32, %s1704_s10, [#allocation3]  }
 0x60d   :  { %1116 = dma.done.wait [#allocation3], 32  }
 0x60e   :  { %1117 = vsyncadd [#allocation3], 4294967264 }
 0x60f   :  { %1118 = dma.done.wait [#allocation5], 64  }
 0x610   :  { %1119 = vsyncadd [#allocation5], 4294967232 }
 0x611   :  { %750 = vsyncpa [#allocation3], 1 }
 0x612   :  { %751 = vsyncpa [#allocation5], 1 }

</bundles_post_ra>
